<compile_context>
chip_gen: v5e
topology: v5e:2x2
jax: 0.10.0
libtpu: 0.0.40
codegen_flags: <defaults>
</compile_context>

<pallas_src>
import math
import functools

import jax
import jax.numpy as jnp
from jax import lax
from jax.experimental import pallas as pl
from jax.experimental.pallas import tpu as pltpu


# Preferred tile sizes.  At the toy test shapes every dim is smaller than the
# preferred tile, so the full dim is used (grid size 1 on that axis, which
# also satisfies the (8,128) BlockSpec constraint); at production shapes
# these give properly pipelined grids.
# TODO(synk): sweep per generation (512-wide tiles on v6e's 128 MiB VMEM;
# stay smaller on v7x's 64 MiB; keep parallel grid extents even on v7x so
# both TensorCores are used).
_LIN_TM, _LIN_TN, _LIN_TK = 256, 256, 512
_ATTN_BLOCK = 256


@functools.lru_cache(maxsize=None)
def _vmem_limit_bytes():
    """Per-generation scoped-VMEM budget: ~3/4 of physical, capped at 96 MiB.
    v5e/v6e (128 MiB physical) -> 96 MiB, v7x (64 MiB) -> 48 MiB; falls back
    to the conservative 32 MiB scoped default if the query is unavailable."""
    try:
        cap = int(pltpu.get_tpu_info().vmem_capacity_bytes)
        return min(96 * 1024 * 1024, cap * 3 // 4)
    except Exception:  # pragma: no cover - defensive: never fail compilation
        return 32 * 1024 * 1024


def _fit(dim, pref, align):
    """Largest block <= pref that divides `dim` and is a multiple of `align`;
    falls back to the full dim (always a legal block shape).
    TODO(synk): for awkward production dims switch to pl.cdiv grids with
    padding/masking instead of the full-dim fallback."""
    b = pref
    while b >= align:
        if dim % b == 0:
            return b
        b //= 2
    return dim


# ------------------------- Tiled linear projection ---------------------------

def _linear_f32_kernel(x_ref, w_ref, b_ref, o_ref):
    # f32 output: accumulate directly into the resident output block (no
    # scratch, no finalize copy).  Bias seeds the accumulator at k == 0.
    @pl.when(pl.program_id(2) == 0)
    def _init():
        o_ref[...] = jnp.broadcast_to(b_ref[...], o_ref.shape).astype(o_ref.dtype)

    o_ref[...] += jnp.dot(x_ref[...], w_ref[...],
                          preferred_element_type=jnp.float32)


def _linear_acc_kernel(x_ref, w_ref, b_ref, o_ref, acc_ref):
    # Low-precision output: keep an f32 VMEM accumulator, cast on finalize.
    @pl.when(pl.program_id(2) == 0)
    def _init():
        acc_ref[...] = jnp.broadcast_to(b_ref[...].astype(jnp.float32),
                                        acc_ref.shape)

    acc_ref[...] += jnp.dot(x_ref[...], w_ref[...],
                            preferred_element_type=jnp.float32)

    @pl.when(pl.program_id(2) == pl.num_programs(2) - 1)
    def _finalize():
        o_ref[...] = acc_ref[...].astype(o_ref.dtype)


def linear(x2d, w, b, *, tm=_LIN_TM, tn=_LIN_TN, tk=_LIN_TK):
    # TODO(synk): fp8 weights (bf16/f32 accumulate) on v7x — its MXU has no
    # int8 path, so any int8 quantization plan must become fp8.
    M, K = x2d.shape
    N = w.shape[1]
    bm, bn, bk = _fit(M, tm, 8), _fit(N, tn, 128), _fit(K, tk, 128)
    grid = (M // bm, N // bn, K // bk)

    out_is_f32 = x2d.dtype == jnp.float32
    kernel = _linear_f32_kernel if out_is_f32 else _linear_acc_kernel
    scratch = [] if out_is_f32 else [pltpu.VMEM((bm, bn), jnp.float32)]

    return pl.pallas_call(
        kernel,
        out_shape=jax.ShapeDtypeStruct((M, N), x2d.dtype),
        grid_spec=pltpu.PrefetchScalarGridSpec(
            num_scalar_prefetch=0,
            grid=grid,
            in_specs=[
                pl.BlockSpec((bm, bk), lambda i, j, k: (i, k)),
                pl.BlockSpec((bk, bn), lambda i, j, k: (k, j)),
                pl.BlockSpec((1, bn), lambda i, j, k: (0, j)),
            ],
            out_specs=pl.BlockSpec((bm, bn), lambda i, j, k: (i, j)),
            scratch_shapes=scratch,
        ),
        compiler_params=pltpu.CompilerParams(
            dimension_semantics=("parallel", "parallel", "arbitrary"),
            vmem_limit_bytes=_vmem_limit_bytes(),
        ),
        cost_estimate=pl.CostEstimate(
            flops=2 * M * N * K,
            transcendentals=0,
            bytes_accessed=int(x2d.dtype.itemsize * (M * K + K * N + M * N + N))),
    )(x2d, w, b)


# ---------------------- Flash grouped-query attention ------------------------

def _flash_gqa_kernel(qi_tab, ki_tab, q_ref, k_ref, v_ref, o_ref,
                      m_sc, l_sc, acc_sc):
    # Grid axis 2 walks the lower triangle of (q_block, kv_block) pairs via
    # scalar-prefetched tables; kv is innermost for each q block.
    # q_ref/o_ref: (1, G, Tq, D)   (all query heads sharing this KV head)
    # k_ref/v_ref: (1, 1, Tk, D)
    # scratch:     m,l (G*Tq, 1), acc (G*Tq, D)  -- online-softmax state
    t = pl.program_id(2)
    qi = qi_tab[t]
    ki = ki_tab[t]
    G, blk_q, D = q_ref.shape[1], q_ref.shape[2], q_ref.shape[3]
    blk_k = k_ref.shape[2]

    @pl.when(ki == 0)
    def _init():
        m_sc[...] = jnp.full(m_sc.shape, -jnp.inf, dtype=m_sc.dtype)
        l_sc[...] = jnp.zeros(l_sc.shape, dtype=l_sc.dtype)
        acc_sc[...] = jnp.zeros(acc_sc.shape, dtype=acc_sc.dtype)

    def _update(masked):
        # One batched matmul for the whole query group: (G*Tq, D) x (D, Tk).
        # Operands stay in their storage dtype (bf16 goes to the MXU natively);
        # scores/softmax state are f32 via preferred_element_type.
        q = q_ref[...].reshape(G * blk_q, D)            # 1/sqrt(D) pre-folded
        k = k_ref[...].reshape(blk_k, D)
        v = v_ref[...].reshape(blk_k, D)
        s = lax.dot_general(q, k, (((1,), (1,)), ((), ())),
                            preferred_element_type=jnp.float32)  # (G*Tq, Tk)
        if masked:   # only the diagonal block needs the causal mask
            row = lax.broadcasted_iota(jnp.int32, s.shape, 0) % blk_q
            col = lax.broadcasted_iota(jnp.int32, s.shape, 1)
            s = jnp.where(row >= col, s, jnp.float32(-1e30))
        m_prev = m_sc[...]
        m_new = jnp.maximum(m_prev, jnp.max(s, axis=-1, keepdims=True))
        alpha = jnp.exp(m_prev - m_new)
        p = jnp.exp(s - m_new)
        l_sc[...] = alpha * l_sc[...] + jnp.sum(p, axis=-1, keepdims=True)
        acc_sc[...] = alpha * acc_sc[...] + jnp.dot(
            p.astype(v.dtype), v, preferred_element_type=jnp.float32)
        m_sc[...] = m_new

    @pl.when(ki < qi)          # strictly-below-diagonal: no mask work at all
    def _off_diag():
        _update(masked=False)

    @pl.when(ki == qi)         # diagonal block == last kv step for this q block
    def _diag_and_finalize():
        _update(masked=True)
        # approx=True would route the reciprocal to the EUP (production
        # setting); exact kept here to stay well inside the f32 tolerance.
        inv_l = pl.reciprocal(l_sc[...], approx=False)
        # TODO(synk): when D < 128, this (.., Tq, D) store is lane-masked
        # (vst.msk); a lane-dense (Tq, G*D) packing would need an in-kernel
        # transpose — revisit for store-bound production shapes.
        o_ref[...] = (acc_sc[...] * inv_l).reshape(1, G, blk_q, D
                                                   ).astype(o_ref.dtype)


def _tri_tables(nblk):
    """(qi, ki) pairs covering the lower triangle, kv index innermost."""
    pairs = [(i, j) for i in range(nblk) for j in range(i + 1)]
    qi = jnp.asarray([p[0] for p in pairs], dtype=jnp.int32)
    ki = jnp.asarray([p[1] for p in pairs], dtype=jnp.int32)
    return qi, ki


def gqa_attention(q, k, v, *, block=_ATTN_BLOCK):
    # q: (B, H, S, D); k, v: (B, KVH, S, D)  -> (B, H, S, D)
    B, H, S, D = q.shape
    KVH = k.shape[1]
    assert H % KVH == 0, "num heads must be divisible by num KV heads"
    G = H // KVH
    blk = _fit(S, block, 8)        # same block for Q and KV keeps the causal
    nblk = S // blk                # diagonal inside a single processed block
    nsteps = nblk * (nblk + 1) // 2
    qi_tab, ki_tab = _tri_tables(nblk)

    causal_frac = (nblk + 1) / (2.0 * nblk)
    itemsize = q.dtype.itemsize
    cost = pl.CostEstimate(
        flops=int(4 * B * H * S * S * D * causal_frac),          # qk^T + pv
        transcendentals=int(2 * B * H * S * S * causal_frac),
        bytes_accessed=int(itemsize * (2 * q.size
                                       + (k.size + v.size) * (nblk + 1) / 2)))

    # TODO(synk): on v5e consider pipeline_mode=pl.Buffered(3) on the K/V
    # specs (their blocks are small and HBM BW is the likely limiter there).
    return pl.pallas_call(
        _flash_gqa_kernel,
        out_shape=jax.ShapeDtypeStruct((B, H, S, D), q.dtype),
        grid_spec=pltpu.PrefetchScalarGridSpec(
            num_scalar_prefetch=2,
            grid=(B, KVH, nsteps),
            in_specs=[
                pl.BlockSpec((1, G, blk, D),
                             lambda b, h, t, qt, kt: (b, h, qt[t], 0)),
                pl.BlockSpec((1, 1, blk, D),
                             lambda b, h, t, qt, kt: (b, h, kt[t], 0)),
                pl.BlockSpec((1, 1, blk, D),
                             lambda b, h, t, qt, kt: (b, h, kt[t], 0)),
            ],
            out_specs=pl.BlockSpec((1, G, blk, D),
                                   lambda b, h, t, qt, kt: (b, h, qt[t], 0)),
            scratch_shapes=[
                pltpu.VMEM((G * blk, 1), jnp.float32),   # running max
                pltpu.VMEM((G * blk, 1), jnp.float32),   # running sum
                pltpu.VMEM((G * blk, D), jnp.float32),   # output accumulator
            ],
        ),
        compiler_params=pltpu.CompilerParams(
            dimension_semantics=("parallel", "parallel", "arbitrary"),
            vmem_limit_bytes=_vmem_limit_bytes(),
        ),
        cost_estimate=cost,
    )(qi_tab, ki_tab, q, k, v)


# ------------------------------- Module glue --------------------------------

def make_rope_tables(seq_len, head_dim, base=10000.0):
    # NeoX-style rotate-half RoPE tables (the reference RotaryEmbedding class
    # is not defined in the original snippet; this convention is used here).
    inv_freq = 1.0 / (base ** (jnp.arange(0, head_dim, 2, dtype=jnp.float32)
                               / head_dim))
    t = jnp.arange(seq_len, dtype=jnp.float32)
    freqs = jnp.outer(t, inv_freq)                        # (S, D/2)
    cos = jnp.concatenate([jnp.cos(freqs)] * 2, axis=-1)  # (S, D)
    sin = jnp.concatenate([jnp.sin(freqs)] * 2, axis=-1)  # (S, D)
    return cos, sin


def apply_rope(x, cos, sin):
    # x: (B, S, Hx, D).  Fused by XLA into the adjacent transpose pass.
    d2 = x.shape[-1] // 2
    rot = jnp.concatenate([-x[..., d2:], x[..., :d2]], axis=-1)
    return x * cos[None, :, None, :] + rot * sin[None, :, None, :]


def init_params(key, embedding_dim, num_heads, num_kv_heads):
    group_factor = num_heads // num_kv_heads
    kv_dim = embedding_dim // group_factor
    ks = jax.random.split(key, 8)
    s = 1.0 / math.sqrt(embedding_dim)
    return {
        "wq": jax.random.normal(ks[0], (embedding_dim, embedding_dim)) * s,
        "bq": jax.random.normal(ks[1], (1, embedding_dim)) * 0.01,
        "wk": jax.random.normal(ks[2], (embedding_dim, kv_dim)) * s,
        "bk": jax.random.normal(ks[3], (1, kv_dim)) * 0.01,
        "wv": jax.random.normal(ks[4], (embedding_dim, kv_dim)) * s,
        "bv": jax.random.normal(ks[5], (1, kv_dim)) * 0.01,
        "wo": jax.random.normal(ks[6], (embedding_dim, embedding_dim)) * s,
        "bo": jax.random.normal(ks[7], (1, embedding_dim)) * 0.01,
    }


def gq_multihead_attention(x, params, cos, sin, *, num_heads, num_kv_heads):
    # Eval mode: attention dropout p=0 and residual dropout are identities.
    B, S, E = x.shape
    D = E // num_heads
    G = num_heads // num_kv_heads
    kv_dim = E // G
    scale = 1.0 / math.sqrt(D)
    x2d = x.reshape(B * S, E)

    # Fused QKV projection: one kernel launch, x2d read from HBM once.
    w_qkv = jnp.concatenate([params["wq"], params["wk"], params["wv"]], axis=1)
    b_qkv = jnp.concatenate([params["bq"], params["bk"], params["bv"]], axis=1)
    qkv = linear(x2d, w_qkv, b_qkv)                       # (B*S, E + 2*kv_dim)
    xq = qkv[:, :E].reshape(B, S, num_heads, D)
    xk = qkv[:, E:E + kv_dim].reshape(B, S, num_kv_heads, D)
    xv = qkv[:, E + kv_dim:].reshape(B, S, num_kv_heads, D)

    # RoPE rides on the same elementwise/transpose pass (no extra HBM pass).
    # 1/sqrt(D) is folded into the (constant) Q tables so the attention kernel
    # never rescales the resident Q block.
    # TODO(synk): at production shapes (G*D a multiple of 128), fold the
    # (B,S,H,D)->(B,H,S,D) permutes into the attention BlockSpec index_maps
    # to drop these wrapper HBM passes; at the tiny test shapes blocking the
    # head (second-minor) dim would violate the (8,128) BlockSpec constraint,
    # so the safe head-major layout is kept.
    q = apply_rope(xq, cos * scale, sin * scale).transpose(0, 2, 1, 3)  # (B,H,S,D)
    k = apply_rope(xk, cos, sin).transpose(0, 2, 1, 3)                  # (B,KVH,S,D)
    v = xv.transpose(0, 2, 1, 3)                                        # (B,KVH,S,D)

    out = gqa_attention(q, k, v)                          # (B, H, S, D)
    out = out.transpose(0, 2, 1, 3).reshape(B * S, E)
    # TODO(synk): optional bf16 activations/weights (v6e/v7x) — the kernels
    # consume storage dtype natively now; kept f32 here for the reference
    # tolerance.
    return linear(out, params["wo"], params["bo"]).reshape(B, S, E)


# ------------------------------ Pure-JAX reference ---------------------------

def reference(x, params, cos, sin, *, num_heads, num_kv_heads):
    B, S, E = x.shape
    D = E // num_heads
    G = num_heads // num_kv_heads
    hp = lax.Precision.HIGHEST

    def lin(z, w, b):
        return jnp.einsum("ne,eo->no", z, w, precision=hp) + b

    x2d = x.reshape(B * S, E)
    q = lin(x2d, params["wq"], params["bq"]).reshape(B, S, num_heads, D)
    k = lin(x2d, params["wk"], params["bk"]).reshape(B, S, num_kv_heads, D)
    v = lin(x2d, params["wv"], params["bv"]).reshape(B, S, num_kv_heads, D)

    def rope(z):
        d2 = D // 2
        rot = jnp.concatenate([-z[..., d2:], z[..., :d2]], axis=-1)
        return z * cos[None, :, None, :] + rot * sin[None, :, None, :]

    q, k = rope(q), rope(k)
    q = q.transpose(0, 2, 1, 3)
    k = jnp.repeat(k.transpose(0, 2, 1, 3), G, axis=1)
    v = jnp.repeat(v.transpose(0, 2, 1, 3), G, axis=1)

    s = jnp.einsum("bhqd,bhkd->bhqk", q, k, precision=hp) / math.sqrt(D)
    mask = jnp.tril(jnp.ones((S, S), bool))
    s = jnp.where(mask[None, None], s, -jnp.inf)
    p = jax.nn.softmax(s, axis=-1)
    o = jnp.einsum("bhqk,bhkd->bhqd", p, v, precision=hp)
    o = o.transpose(0, 2, 1, 3).reshape(B * S, E)
    return lin(o, params["wo"], params["bo"]).reshape(B, S, E)


# ----------------------------------- Main ------------------------------------

if __name__ == "__main__":
    B, S, E = 2, 8, 32
    NUM_HEADS, NUM_KV_HEADS = 4, 2
    D = E // NUM_HEADS

    key = jax.random.PRNGKey(0)
    kx, kp = jax.random.split(key)
    x = jax.random.normal(kx, (B, S, E), jnp.float32)
    params = init_params(kp, E, NUM_HEADS, NUM_KV_HEADS)
    cos, sin = make_rope_tables(S, D)

    out = gq_multihead_attention(x, params, cos, sin,
                                 num_heads=NUM_HEADS,
                                 num_kv_heads=NUM_KV_HEADS)
    out = jax.block_until_ready(out)

    ref = reference(x, params, cos, sin,
                    num_heads=NUM_HEADS, num_kv_heads=NUM_KV_HEADS)
    assert out.shape == (B, S, E)
    err = float(jnp.max(jnp.abs(out - ref)))
    assert err < 2e-3, f"kernel mismatch vs reference: {err}"

    print("KERNEL_OK")
</pallas_src>

<mosaic_0001>
module attributes {stable_mosaic.version = 11 : i64} {
  func.func @_linear_f32_kernel(%arg0: i32, %arg1: i32, %arg2: i32, %arg3: memref<16x32xf32, #tpu.memory_space<vmem>>, %arg4: memref<32x64xf32, #tpu.memory_space<vmem>>, %arg5: memref<1x64xf32, #tpu.memory_space<vmem>>, %arg6: memref<16x64xf32, #tpu.memory_space<vmem>>) attributes {dimension_semantics = [#tpu.dimension_semantics<parallel>, #tpu.dimension_semantics<parallel>, #tpu.dimension_semantics<arbitrary>], iteration_bounds = array<i64: 1, 1, 1>, scalar_prefetch = 0 : i64, scratch_operands = 0 : i64, tpu.core_type = #tpu.core_type<tc>, window_params = [{transform_indices = @transform_0, window_bounds = array<i64: 16, 32>}, {transform_indices = @transform_1, window_bounds = array<i64: 32, 64>}, {transform_indices = @transform_2, window_bounds = array<i64: 1, 64>}, {transform_indices = @transform_3, window_bounds = array<i64: 16, 64>}]} {
    %c0_i32 = arith.constant 0 : i32
    %0 = arith.cmpi eq, %arg2, %c0_i32 : i32
    %1 = arith.extui %0 : i1 to i32
    %c0_i32_0 = arith.constant 0 : i32
    %2 = arith.cmpi ne, %1, %c0_i32_0 : i32
    scf.if %2 {
      %c0_8 = arith.constant 0 : index
      %c0_9 = arith.constant 0 : index
      %9 = vector.load %arg5[%c0_8, %c0_9] : memref<1x64xf32, #tpu.memory_space<vmem>>, vector<1x64xf32>
      %10 = vector.shape_cast %9 : vector<1x64xf32> to vector<1x64xf32>
      %11 = vector.broadcast %10 : vector<1x64xf32> to vector<16x64xf32>
      %c0_10 = arith.constant 0 : index
      %c0_11 = arith.constant 0 : index
      %12 = vector.load %arg6[%c0_10, %c0_11] : memref<16x64xf32, #tpu.memory_space<vmem>>, vector<16x64xf32>
      tpu.vector_store %arg6[%c0_10, %c0_11], %11 {strides = array<i32>} : memref<16x64xf32, #tpu.memory_space<vmem>>, vector<16x64xf32>,
    } else {
    }
    %c0 = arith.constant 0 : index
    %c0_1 = arith.constant 0 : index
    %3 = vector.load %arg6[%c0, %c0_1] : memref<16x64xf32, #tpu.memory_space<vmem>>, vector<16x64xf32>
    %c0_2 = arith.constant 0 : index
    %c0_3 = arith.constant 0 : index
    %4 = vector.load %arg3[%c0_2, %c0_3] : memref<16x32xf32, #tpu.memory_space<vmem>>, vector<16x32xf32>
    %c0_4 = arith.constant 0 : index
    %c0_5 = arith.constant 0 : index
    %5 = vector.load %arg4[%c0_4, %c0_5] : memref<32x64xf32, #tpu.memory_space<vmem>>, vector<32x64xf32>
    %cst = arith.constant dense<0.000000e+00> : vector<16x64xf32>
    %6 = tpu.matmul %4, %5, %cst {dimension_numbers = #tpu.dot_dimension_numbers<[1], [0], [0], [1], [0, 0, 1, 1], [], []>} : vector<16x32xf32>, vector<32x64xf32>, vector<16x64xf32> -> vector<16x64xf32>
    %7 = arith.addf %3, %6 : vector<16x64xf32>
    %c0_6 = arith.constant 0 : index
    %c0_7 = arith.constant 0 : index
    %8 = vector.load %arg6[%c0_6, %c0_7] : memref<16x64xf32, #tpu.memory_space<vmem>>, vector<16x64xf32>
    tpu.vector_store %arg6[%c0_6, %c0_7], %7 {strides = array<i32>} : memref<16x64xf32, #tpu.memory_space<vmem>>, vector<16x64xf32>,
    return
  }
  func.func @transform_0(%arg0: i32, %arg1: i32, %arg2: i32) -> (i32, i32) {
    %c0_i32 = arith.constant 0 : i32
    return %arg0, %arg2 : i32, i32
  }
  func.func @transform_1(%arg0: i32, %arg1: i32, %arg2: i32) -> (i32, i32) {
    %c0_i32 = arith.constant 0 : i32
    return %arg2, %arg1 : i32, i32
  }
  func.func @transform_2(%arg0: i32, %arg1: i32, %arg2: i32) -> (i32, i32) {
    %c0_i32 = arith.constant 0 : i32
    %c0_i32_0 = arith.constant 0 : i32
    return %c0_i32, %arg1 : i32, i32
  }
  func.func @transform_3(%arg0: i32, %arg1: i32, %arg2: i32) -> (i32, i32) {
    %c0_i32 = arith.constant 0 : i32
    return %arg0, %arg1 : i32, i32
  }
}

</mosaic_0001>

<bundles_post_ra>
// kernel: tpu_custom_call.1
= control target key start
LH: loop header
LB: loop body
LE: loop exit
PB: predicated region body
PF: predicated region fallthrough
CT: control target
= control target key end

     0   :  { %8 = vsyncpa [#allocation3], 0  ;;  %s261_s0 = inlined_call_operand.hbm [shape: f32[16,32], index: 0, kind: input, shape index: {}]   ;;  %s262_s1 = inlined_call_operand.hbm [shape: f32[32,64], index: 1, kind: input, shape index: {}]   ;;  %s263_s2 = inlined_call_operand.vmem [shape: f32[1,64], index: 2, kind: input, shape index: {}]   ;;  %s264_s3 = inlined_call_operand.hbm [shape: f32[16,64], index: 3, kind: output, shape index: {}]  }
   0x1   :  { %9 = vsyncpa [#allocation6], 0 }
   0x2   :  { %10 = vsyncpa [#allocation4], 0  ;;  %s15_s14 = sshll.u32 %s261_s0, 4  ;;  %s211_s15 = smov [#allocation2]   ;;  %s16_s14 = int_to_ptr.hbm [resolvable:$true] %s15_s14 }
   0x3   :  { %s17_s16 = sshll.u32 %s211_s15, 4  ;;  %s28_s19 = sshll.u32 %s262_s1, 4  ;;  %s18_s16 = int_to_ptr.vmem [resolvable:$true] %s17_s16  ;;  %s29_s19 = int_to_ptr.hbm [resolvable:$true] %s28_s19 }
   0x4   :  { %s212_s20 = smov 128   ;;  %s213_s21 = smov 8  }
   0x5   :  { %23 = dma.hbm_to_vmem [thread:$0]  %s16_s14, 256, %s18_s16, [#allocation3], %s212_s20, %s212_s20, %s213_s21  }
   0x6   :  { %s214_s22 = smov [#allocation5]  }
   0x7   :  { %s30_s23 = sshll.u32 %s214_s22, 4  ;;  %s31_s23 = int_to_ptr.vmem [resolvable:$true] %s30_s23 }
   0x8   :  { %36 = dma.hbm_to_vmem [thread:$0]  %s29_s19, 512, %s31_s23, [#allocation6], %s212_s20, %s212_s20, %s213_s21  }
   0x9   :  { %205 = dma.done.wait [#allocation3], 256  }
   0xa   :  { %206 = vsyncadd [#allocation3], 4294967040 }
   0xb   :  { %207 = dma.done.wait [#allocation6], 512  }
   0xc   :  { %208 = vsyncadd [#allocation6], 4294966784  ;;  %v65_v0 = vld [vmem:[#allocation5 + $0x18] sm:$0xff]  ;;  %v64_v1 = vld [vmem:[#allocation5 + $0x10] sm:$0xff]  ;;  %vm55_vm0 = vcmask 523264   ;;  %vm66_vm1 = vcmask 261120  }
   0xd   :  { %85 = vmatpush.msra.mxu0 %v65_v0  ;;  %123 = vmatpush.msra.mxu1 %v65_v0  ;;  %v63_v2 = vld [vmem:[#allocation5 + $0x8] sm:$0xff]  ;;  %v132_v3 = vld [vmem:[%s263_s2] ss:$0 sm:$0xff]  ;;  %v62_v4 = vld [vmem:[#allocation5] sm:$0xff]  ;;  %s215_s24 = smov [#allocation7]   ;;  %s107_s27 = sshll.u32 %s264_s3, 4  ;;  %s108_s27 = int_to_ptr.hbm [resolvable:$true] %s107_s27 }
   0xe   :  { %56 = vst.msk [vmem:[#allocation7] sm:$0xff] %vm55_vm0, %v132_v3  ;;  %v60_v5 = vld [vmem:[#allocation2] sm:$0xff]  ;;  %v61_v6 = vld [vmem:[#allocation2 + $0x8] sm:$0xff]  ;;  %s105_s2 = sshll.u32 %s215_s24, 4  ;;  %s106_s2 = int_to_ptr.vmem [resolvable:$true] %s105_s2 }
   0xf   :  { %86 = vmatpush.msra.mxu0 %v64_v1  ;;  %124 = vmatpush.msra.mxu1 %v64_v1  ;;  %57 = vst.msk [vmem:[#allocation7 + $0x8] sm:$0xff] %vm55_vm0, %v132_v3 }
  0x11   :  { %87 = vmatpush.msra.mxu0 %v63_v2  ;;  %125 = vmatpush.msra.mxu1 %v63_v2 }
  0x13   :  { %88 = vmatpush.msra.mxu0 %v62_v4  ;;  %126 = vmatpush.msra.mxu1 %v62_v4 }
  0x14   :  { %121 = vmatmul.msk.f32.vlgmr.msra.gmra.mxu0 %vm66_vm1, %v60_v5  ;;  %122 = vmatmul.msk.f32.vlgmr.msra.gmra.mxu1 %vm66_vm1, %v61_v6 }
  0x15   :  { %v58_v7 = vld [vmem:[#allocation7] sm:$0xff] }
  0x16   :  { %v59_v8 = vld [vmem:[#allocation7 + $0x8] sm:$0xff] }
  0x91   :  { %v90_v9 = vpop.f32.mrf.mxu0  ;;  %v93_v10 = vpop.f32.mrf.mxu1 }
  0x92   :  { %v96_v11 = vadd.f32 %v90_v9, %v58_v7  ;;  %v97_v12 = vadd.f32 %v93_v10, %v59_v8 }
  0x94   :  { %99 = vst.msk [vmem:[#allocation7] sm:$0xff] %vm55_vm0, %v96_v11 }
  0x95   :  { %100 = vst.msk [vmem:[#allocation7 + $0x8] sm:$0xff] %vm55_vm0, %v97_v12 }
  0x96   :  { %113 = dma.vmem_to_hbm [thread:$0]  %s106_s2, 256, %s108_s27, [#allocation4], %s212_s20, %s212_s20, %s213_s21  }
  0x97   :  { %209 = dma.done.wait [#allocation4], 256  }
  0x98   :  { %210 = vsyncadd [#allocation4], 4294967040 }
  0x99   :  { %118 = vsyncpa [#allocation3], 1 }
  0x9a   :  { %119 = vsyncpa [#allocation6], 1 }
  0x9b   :  { %120 = vsyncpa [#allocation4], 1 }

</bundles_post_ra>
